<compile_context>
chip_gen: v7x
topology: tpu7x:2x2x1
jax: 0.10.0
libtpu: 0.0.40
codegen_flags: <defaults>
</compile_context>

<pallas_src>
import functools

import jax
import jax.numpy as jnp
from jax.experimental import pallas as pl
from jax.experimental.pallas import tpu as pltpu


def _round_up(x, m):
    return ((x + m - 1) // m) * m


# ----------------------------------------------------------------------------- kernel
def luong_decode_kernel(
    tok_ref,   # (1, Bp, 1) int32   token id fed at this step
    h0_ref,    # (Bp, H)            initial hidden (used only at t == 0)
    enc_ref,   # (Bp, S, H)         encoder outputs (batch-major), VMEM-resident
    emb_ref,   # (Vin_p, H)         embedding table (zero-padded rows)
    w_i_ref,   # (3, H, H)          GRU input weights, per gate (r, z, n), transposed
    w_h_ref,   # (3, H, H)          GRU hidden weights, per gate, transposed
    b_ref,     # (4, H)             [b_ir+b_hr, b_iz+b_hz, b_in, b_hn]
    w_c_ref,   # (2, H, H)          concat Linear split: [W_c[:, :H].T, W_c[:, H:].T]
    b_c_ref,   # (1, H)
    w_o_ref,   # (H, Vp)            out Linear weight, transposed, zero-padded cols
    b_o_ref,   # (1, Vp)            out bias, padded cols = -1e30
    out_ref,   # (1, Bp, Vp)        per-step softmax distribution
    hid_ref,   # (Bp, H)            final hidden (resident across the time grid)
    h_scr,     # VMEM scratch (Bp, H): hidden-state carry
):
    t = pl.program_id(0)

    @pl.when(t == 0)
    def _():
        h_scr[...] = h0_ref[...]

    B, H = h_scr.shape
    Vin_p = emb_ref.shape[0]
    f32 = jnp.float32

    # ---- embedding lookup as a one-hot matmul (MXU); no XLA gather per step ----
    tok = tok_ref[0]                                               # (B, 1) int32
    iota = jax.lax.broadcasted_iota(jnp.int32, (B, Vin_p), 1)
    onehot = (iota == tok).astype(f32)                             # (B, Vin_p)
    x = jnp.dot(onehot, emb_ref[...], preferred_element_type=f32)  # (B, H)
    # TODO(synk): nn.Dropout on the embedding is identity here (inference semantics).

    h = h_scr[...]

    # ---- GRU cell (PyTorch gate order r, z, n), per-gate lane-aligned matmuls ----
    b_r, b_z = b_ref[0:1, :], b_ref[1:2, :]
    b_in, b_hn = b_ref[2:3, :], b_ref[3:4, :]
    r = jax.nn.sigmoid(jnp.dot(x, w_i_ref[0], preferred_element_type=f32)
                       + jnp.dot(h, w_h_ref[0], preferred_element_type=f32) + b_r)
    z = jax.nn.sigmoid(jnp.dot(x, w_i_ref[1], preferred_element_type=f32)
                       + jnp.dot(h, w_h_ref[1], preferred_element_type=f32) + b_z)
    n = jnp.tanh(jnp.dot(x, w_i_ref[2], preferred_element_type=f32) + b_in
                 + r * (jnp.dot(h, w_h_ref[2], preferred_element_type=f32) + b_hn))
    h_new = (1.0 - z) * n + z * h                                  # (B, H)
    h_scr[...] = h_new
    hid_ref[...] = h_new        # resident output block: only last step reaches HBM

    # ---- dot attention over the encoder outputs (tiny S, H -> VPU formulation).
    # At production S/H switch to lax.dot_general batched matmuls (MXU).
    enc = enc_ref[...]                                             # (B, S, H)
    scores = jnp.sum(h_new[:, None, :] * enc, axis=2)              # (B, S)
    m = jnp.max(scores, axis=1, keepdims=True)
    e = jnp.exp(scores - m)
    attn = e / jnp.sum(e, axis=1, keepdims=True)                   # (B, S)
    context = jnp.sum(attn[:, :, None] * enc, axis=1)              # (B, H)

    # ---- concat Linear split into two matmuls (no lane concat) + tanh ----
    concat_out = jnp.tanh(
        jnp.dot(h_new, w_c_ref[0], preferred_element_type=f32)
        + jnp.dot(context, w_c_ref[1], preferred_element_type=f32)
        + b_c_ref[...])                                            # (B, H)

    # ---- output projection + softmax over padded V (padded bias = -1e30 -> 0) ----
    logits = jnp.dot(concat_out, w_o_ref[...], preferred_element_type=f32) + b_o_ref[...]
    lm = jnp.max(logits, axis=1, keepdims=True)
    le = jnp.exp(logits - lm)
    out_ref[0] = le / jnp.sum(le, axis=1, keepdims=True)           # (B, Vp)


# ---------------------------------------------------------------------------- packing
def pack_params(params):
    """One-time weight packing (do NOT redo this per decode call)."""
    H = params["w_concat"].shape[0]
    emb = params["embedding"]
    V_in, V = emb.shape[0], params["b_out"].shape[0]
    Vin_p, V_p = _round_up(V_in, 128), _round_up(V, 128)
    f32 = jnp.float32

    w_ih, w_hh = params["gru_w_ih"], params["gru_w_hh"]            # (3H, H)
    w_i = jnp.stack([w_ih[0:H].T, w_ih[H:2 * H].T, w_ih[2 * H:3 * H].T])   # (3,H,H)
    w_h = jnp.stack([w_hh[0:H].T, w_hh[H:2 * H].T, w_hh[2 * H:3 * H].T])
    b_ih, b_hh = params["gru_b_ih"], params["gru_b_hh"]
    b_g = jnp.stack([b_ih[0:H] + b_hh[0:H],
                     b_ih[H:2 * H] + b_hh[H:2 * H],
                     b_ih[2 * H:3 * H],
                     b_hh[2 * H:3 * H]]).astype(f32)               # (4, H)

    w_c = params["w_concat"]                                       # (H, 2H)
    w_c2 = jnp.stack([w_c[:, 0:H].T, w_c[:, H:2 * H].T])           # (2, H, H)
    b_c = params["b_concat"][None, :].astype(f32)                  # (1, H)

    w_o = jnp.zeros((H, V_p), f32).at[:, :V].set(params["w_out"].T)
    b_o = jnp.full((1, V_p), -1e30, f32).at[0, :V].set(params["b_out"])
    emb_p = jnp.zeros((Vin_p, H), f32).at[:V_in].set(emb)

    return dict(emb=emb_p, w_i=w_i, w_h=w_h, b_g=b_g,
                w_c=w_c2, b_c=b_c, w_o=w_o, b_o=b_o)


# ----------------------------------------------------------------------------- driver
@functools.partial(jax.jit, static_argnames=("output_size",))
def luong_decoder_decode(tokens, last_hidden, encoder_outputs, packed, *, output_size):
    """
    Runs T decode steps (teacher-forced input tokens) in ONE fused pallas_call.
      tokens:          (T, B) int32  -- word id fed at each step
      last_hidden:     (1, B, H)     -- initial hidden state
      encoder_outputs: (S, B, H)
    returns: outputs (T, B, output_size) softmax dists, hidden (1, B, H)
    T = 1 reproduces a single LuongAttnDecoderRNN.forward call.
    """
    T, B = tokens.shape
    S = encoder_outputs.shape[0]
    H = last_hidden.shape[2]
    Bp = _round_up(B, 8)
    V_p = packed["w_o"].shape[1]
    Vin_p = packed["emb"].shape[0]

    # Once-per-decode batch padding / batch-major layout (amortised over T steps).
    tok_p = jnp.zeros((T, Bp, 1), jnp.int32).at[:, :B, 0].set(tokens)
    h0_p = jnp.zeros((Bp, H), jnp.float32).at[:B].set(last_hidden[0])
    enc_p = jnp.zeros((Bp, S, H), jnp.float32).at[:B].set(
        jnp.transpose(encoder_outputs, (1, 0, 2)))

    c2 = lambda t: (0, 0)
    c3 = lambda t: (0, 0, 0)

    grid_spec = pltpu.PrefetchScalarGridSpec(
        num_scalar_prefetch=0,
        grid=(T,),
        in_specs=[
            pl.BlockSpec((1, Bp, 1), lambda t: (t, 0, 0)),   # tokens (per step)
            pl.BlockSpec((Bp, H), c2),                       # h0 (resident)
            pl.BlockSpec((Bp, S, H), c3),                    # encoder outputs
            pl.BlockSpec((Vin_p, H), c2),                    # embedding table
            pl.BlockSpec((3, H, H), c3),                     # GRU input weights
            pl.BlockSpec((3, H, H), c3),                     # GRU hidden weights
            pl.BlockSpec((4, H), c2),                        # GRU biases
            pl.BlockSpec((2, H, H), c3),                     # concat weights
            pl.BlockSpec((1, H), c2),                        # concat bias
            pl.BlockSpec((H, V_p), c2),                      # out weight
            pl.BlockSpec((1, V_p), c2),                      # out bias
        ],
        out_specs=(
            pl.BlockSpec((1, Bp, V_p), lambda t: (t, 0, 0)),  # per-step softmax
            pl.BlockSpec((Bp, H), c2),                        # final hidden
        ),
        scratch_shapes=[pltpu.VMEM((Bp, H), jnp.float32)],    # hidden-state carry
    )

    out_pad, hid_pad = pl.pallas_call(
        luong_decode_kernel,
        out_shape=(jax.ShapeDtypeStruct((T, Bp, V_p), jnp.float32),
                   jax.ShapeDtypeStruct((Bp, H), jnp.float32)),
        grid_spec=grid_spec,
        compiler_params=pltpu.CompilerParams(dimension_semantics=("arbitrary",)),
    )(tok_p, h0_p, enc_p, packed["emb"], packed["w_i"], packed["w_h"], packed["b_g"],
      packed["w_c"], packed["b_c"], packed["w_o"], packed["b_o"])

    return out_pad[:, :B, :output_size], hid_pad[None, :B, :]


# -------------------------------------------------------------------------- reference
def _reference_decode(tokens, last_hidden, encoder_outputs, params):
    """Pure-JAX reference: T sequential calls of the PyTorch module's forward."""
    H = last_hidden.shape[2]
    h = last_hidden[0]
    enc = jnp.transpose(encoder_outputs, (1, 0, 2))
    outs = []
    for t in range(tokens.shape[0]):
        x = params["embedding"][tokens[t]]
        gi = x @ params["gru_w_ih"].T + params["gru_b_ih"]
        gh = h @ params["gru_w_hh"].T + params["gru_b_hh"]
        r = jax.nn.sigmoid(gi[:, :H] + gh[:, :H])
        z = jax.nn.sigmoid(gi[:, H:2 * H] + gh[:, H:2 * H])
        n = jnp.tanh(gi[:, 2 * H:] + r * gh[:, 2 * H:])
        h = (1.0 - z) * n + z * h
        scores = jnp.sum(h[:, None, :] * enc, axis=2)
        attn = jax.nn.softmax(scores, axis=1)
        ctx = jnp.sum(attn[:, :, None] * enc, axis=1)
        cat = jnp.concatenate([h, ctx], axis=1)
        co = jnp.tanh(cat @ params["w_concat"].T + params["b_concat"])
        logits = co @ params["w_out"].T + params["b_out"]
        outs.append(jax.nn.softmax(logits, axis=1))
    return jnp.stack(outs), h[None]


if __name__ == "__main__":
    # Small shapes implied by the module: batch=2, hidden=32, encoder seq=8,
    # input vocab=50, output vocab=48, n_layers=1, attn='dot'; T=6 fused decode steps.
    B, H, S, T = 2, 32, 8, 6
    VOCAB_IN, VOCAB_OUT = 50, 48

    key = jax.random.PRNGKey(0)
    keys = jax.random.split(key, 12)
    f32 = jnp.float32

    params = {
        "embedding": jax.random.normal(keys[0], (VOCAB_IN, H), f32) * 0.1,
        "gru_w_ih": jax.random.normal(keys[1], (3 * H, H), f32) * 0.1,
        "gru_w_hh": jax.random.normal(keys[2], (3 * H, H), f32) * 0.1,
        "gru_b_ih": jax.random.normal(keys[3], (3 * H,), f32) * 0.1,
        "gru_b_hh": jax.random.normal(keys[4], (3 * H,), f32) * 0.1,
        "w_concat": jax.random.normal(keys[5], (H, 2 * H), f32) * 0.1,
        "b_concat": jax.random.normal(keys[6], (H,), f32) * 0.1,
        "w_out": jax.random.normal(keys[7], (VOCAB_OUT, H), f32) * 0.1,
        "b_out": jax.random.normal(keys[8], (VOCAB_OUT,), f32) * 0.1,
    }

    tokens = jax.random.randint(keys[9], (T, B), 0, VOCAB_IN, dtype=jnp.int32)
    last_hidden = jax.random.normal(keys[10], (1, B, H), f32)
    encoder_outputs = jax.random.normal(keys[11], (S, B, H), f32)

    packed = pack_params(params)          # one-time weight packing
    out, hidden = luong_decoder_decode(tokens, last_hidden, encoder_outputs, packed,
                                       output_size=VOCAB_OUT)
    jax.block_until_ready((out, hidden))

    with jax.default_matmul_precision("highest"):
        ref_out, ref_hid = _reference_decode(tokens, last_hidden, encoder_outputs, params)

    assert out.shape == (T, B, VOCAB_OUT)
    assert hidden.shape == (1, B, H)
    assert jnp.allclose(out, ref_out, atol=1e-4, rtol=1e-4)
    assert jnp.allclose(hidden, ref_hid, atol=1e-4, rtol=1e-4)
    assert jnp.allclose(jnp.sum(out, axis=-1), 1.0, atol=1e-5)

    print("KERNEL_OK")
</pallas_src>

<mosaic_0001>
module attributes {stable_mosaic.version = 11 : i64} {
  func.func @luong_decode_kernel(%arg0: i32, %arg1: memref<1x8x1xi32, #tpu.memory_space<vmem>>, %arg2: memref<8x32xf32, #tpu.memory_space<vmem>>, %arg3: memref<8x8x32xf32, #tpu.memory_space<vmem>>, %arg4: memref<128x32xf32, #tpu.memory_space<vmem>>, %arg5: memref<3x32x32xf32, #tpu.memory_space<vmem>>, %arg6: memref<3x32x32xf32, #tpu.memory_space<vmem>>, %arg7: memref<4x32xf32, #tpu.memory_space<vmem>>, %arg8: memref<2x32x32xf32, #tpu.memory_space<vmem>>, %arg9: memref<1x32xf32, #tpu.memory_space<vmem>>, %arg10: memref<32x128xf32, #tpu.memory_space<vmem>>, %arg11: memref<1x128xf32, #tpu.memory_space<vmem>>, %arg12: memref<1x8x128xf32, #tpu.memory_space<vmem>>, %arg13: memref<8x32xf32, #tpu.memory_space<vmem>>, %arg14: memref<8x32xf32, #tpu.memory_space<vmem>>) attributes {dimension_semantics = [#tpu.dimension_semantics<arbitrary>], iteration_bounds = array<i64: 6>, scalar_prefetch = 0 : i64, scratch_operands = 1 : i64, tpu.core_type = #tpu.core_type<tc>, window_params = [{transform_indices = @transform_0, window_bounds = array<i64: 1, 8, 1>}, {pipeline_mode = #tpu.pipeline_mode<synchronous>, transform_indices = @transform_1, window_bounds = array<i64: 8, 32>}, {pipeline_mode = #tpu.pipeline_mode<synchronous>, transform_indices = @transform_2, window_bounds = array<i64: 8, 8, 32>}, {pipeline_mode = #tpu.pipeline_mode<synchronous>, transform_indices = @transform_3, window_bounds = array<i64: 128, 32>}, {pipeline_mode = #tpu.pipeline_mode<synchronous>, transform_indices = @transform_4, window_bounds = array<i64: 3, 32, 32>}, {pipeline_mode = #tpu.pipeline_mode<synchronous>, transform_indices = @transform_5, window_bounds = array<i64: 3, 32, 32>}, {pipeline_mode = #tpu.pipeline_mode<synchronous>, transform_indices = @transform_6, window_bounds = array<i64: 4, 32>}, {pipeline_mode = #tpu.pipeline_mode<synchronous>, transform_indices = @transform_7, window_bounds = array<i64: 2, 32, 32>}, {pipeline_mode = #tpu.pipeline_mode<synchronous>, transform_indices = @transform_8, window_bounds = array<i64: 1, 32>}, {pipeline_mode = #tpu.pipeline_mode<synchronous>, transform_indices = @transform_9, window_bounds = array<i64: 32, 128>}, {pipeline_mode = #tpu.pipeline_mode<synchronous>, transform_indices = @transform_10, window_bounds = array<i64: 1, 128>}, {transform_indices = @transform_11, window_bounds = array<i64: 1, 8, 128>}, {pipeline_mode = #tpu.pipeline_mode<synchronous>, transform_indices = @transform_12, window_bounds = array<i64: 8, 32>}]} {
    %c0_i32 = arith.constant 0 : i32
    %0 = arith.cmpi eq, %arg0, %c0_i32 : i32
    %1 = arith.extui %0 : i1 to i32
    %c0_i32_0 = arith.constant 0 : i32
    %2 = arith.cmpi ne, %1, %c0_i32_0 : i32
    scf.if %2 {
      %c0_70 = arith.constant 0 : index
      %c0_71 = arith.constant 0 : index
      %111 = vector.load %arg2[%c0_70, %c0_71] : memref<8x32xf32, #tpu.memory_space<vmem>>, vector<8x32xf32>
      %c0_72 = arith.constant 0 : index
      %c0_73 = arith.constant 0 : index
      %112 = vector.load %arg14[%c0_72, %c0_73] : memref<8x32xf32, #tpu.memory_space<vmem>>, vector<8x32xf32>
      tpu.vector_store %arg14[%c0_72, %c0_73], %111 {strides = array<i32>} : memref<8x32xf32, #tpu.memory_space<vmem>>, vector<8x32xf32>,
    } else {
    }
    %c0 = arith.constant 0 : index
    %c0_1 = arith.constant 0 : index
    %c0_2 = arith.constant 0 : index
    %3 = vector.load %arg1[%c0, %c0_1, %c0_2] : memref<1x8x1xi32, #tpu.memory_space<vmem>>, vector<1x8x1xi32>
    %4 = vector.shape_cast %3 : vector<1x8x1xi32> to vector<8x1xi32>
    %5 = tpu.iota {dimensions = array<i32: 1>} : vector<8x128xi32>
    %6 = vector.broadcast %4 : vector<8x1xi32> to vector<8x128xi32>
    %7 = arith.cmpi eq, %5, %6 : vector<8x128xi32>
    %8 = arith.extui %7 : vector<8x128xi1> to vector<8x128xi32>
    %9 = arith.sitofp %8 : vector<8x128xi32> to vector<8x128xf32>
    %c0_3 = arith.constant 0 : index
    %c0_4 = arith.constant 0 : index
    %10 = vector.load %arg4[%c0_3, %c0_4] : memref<128x32xf32, #tpu.memory_space<vmem>>, vector<128x32xf32>
    %cst = arith.constant dense<0.000000e+00> : vector<8x32xf32>
    %11 = tpu.matmul %9, %10, %cst {dimension_numbers = #tpu.dot_dimension_numbers<[1], [0], [0], [1], [0, 0, 1, 1], [], []>} : vector<8x128xf32>, vector<128x32xf32>, vector<8x32xf32> -> vector<8x32xf32>
    %c0_5 = arith.constant 0 : index
    %c0_6 = arith.constant 0 : index
    %12 = vector.load %arg14[%c0_5, %c0_6] : memref<8x32xf32, #tpu.memory_space<vmem>>, vector<8x32xf32>
    %c0_7 = arith.constant 0 : index
    %c0_8 = arith.constant 0 : index
    %13 = vector.load %arg7[%c0_7, %c0_8] : memref<4x32xf32, #tpu.memory_space<vmem>>, vector<1x32xf32>
    %c1 = arith.constant 1 : index
    %c0_9 = arith.constant 0 : index
    %14 = vector.load %arg7[%c1, %c0_9] : memref<4x32xf32, #tpu.memory_space<vmem>>, vector<1x32xf32>
    %c2 = arith.constant 2 : index
    %c0_10 = arith.constant 0 : index
    %15 = vector.load %arg7[%c2, %c0_10] : memref<4x32xf32, #tpu.memory_space<vmem>>, vector<1x32xf32>
    %c3 = arith.constant 3 : index
    %c0_11 = arith.constant 0 : index
    %16 = vector.load %arg7[%c3, %c0_11] : memref<4x32xf32, #tpu.memory_space<vmem>>, vector<1x32xf32>
    %c0_12 = arith.constant 0 : index
    %c0_13 = arith.constant 0 : index
    %c0_14 = arith.constant 0 : index
    %17 = vector.load %arg5[%c0_12, %c0_13, %c0_14] : memref<3x32x32xf32, #tpu.memory_space<vmem>>, vector<1x32x32xf32>
    %18 = vector.shape_cast %17 : vector<1x32x32xf32> to vector<32x32xf32>
    %cst_15 = arith.constant dense<0.000000e+00> : vector<8x32xf32>
    %19 = tpu.matmul %11, %18, %cst_15 {dimension_numbers = #tpu.dot_dimension_numbers<[1], [0], [0], [1], [0, 0, 1, 1], [], []>} : vector<8x32xf32>, vector<32x32xf32>, vector<8x32xf32> -> vector<8x32xf32>
    %c0_16 = arith.constant 0 : index
    %c0_17 = arith.constant 0 : index
    %c0_18 = arith.constant 0 : index
    %20 = vector.load %arg6[%c0_16, %c0_17, %c0_18] : memref<3x32x32xf32, #tpu.memory_space<vmem>>, vector<1x32x32xf32>
    %21 = vector.shape_cast %20 : vector<1x32x32xf32> to vector<32x32xf32>
    %cst_19 = arith.constant dense<0.000000e+00> : vector<8x32xf32>
    %22 = tpu.matmul %12, %21, %cst_19 {dimension_numbers = #tpu.dot_dimension_numbers<[1], [0], [0], [1], [0, 0, 1, 1], [], []>} : vector<8x32xf32>, vector<32x32xf32>, vector<8x32xf32> -> vector<8x32xf32>
    %23 = arith.addf %19, %22 : vector<8x32xf32>
    %24 = vector.broadcast %13 : vector<1x32xf32> to vector<8x32xf32>
    %25 = arith.addf %23, %24 : vector<8x32xf32>
    %26 = arith.negf %25 : vector<8x32xf32>
    %27 = math.exp %26 : vector<8x32xf32>
    %cst_20 = arith.constant 1.000000e+00 : f32
    %28 = vector.broadcast %cst_20 : f32 to vector<8x32xf32>
    %29 = arith.addf %28, %27 : vector<8x32xf32>
    %30 = arith.divf %28, %29 : vector<8x32xf32>
    %c1_21 = arith.constant 1 : index
    %c0_22 = arith.constant 0 : index
    %c0_23 = arith.constant 0 : index
    %31 = vector.load %arg5[%c1_21, %c0_22, %c0_23] : memref<3x32x32xf32, #tpu.memory_space<vmem>>, vector<1x32x32xf32>
    %32 = vector.shape_cast %31 : vector<1x32x32xf32> to vector<32x32xf32>
    %cst_24 = arith.constant dense<0.000000e+00> : vector<8x32xf32>
    %33 = tpu.matmul %11, %32, %cst_24 {dimension_numbers = #tpu.dot_dimension_numbers<[1], [0], [0], [1], [0, 0, 1, 1], [], []>} : vector<8x32xf32>, vector<32x32xf32>, vector<8x32xf32> -> vector<8x32xf32>
    %c1_25 = arith.constant 1 : index
    %c0_26 = arith.constant 0 : index
    %c0_27 = arith.constant 0 : index
    %34 = vector.load %arg6[%c1_25, %c0_26, %c0_27] : memref<3x32x32xf32, #tpu.memory_space<vmem>>, vector<1x32x32xf32>
    %35 = vector.shape_cast %34 : vector<1x32x32xf32> to vector<32x32xf32>
    %cst_28 = arith.constant dense<0.000000e+00> : vector<8x32xf32>
    %36 = tpu.matmul %12, %35, %cst_28 {dimension_numbers = #tpu.dot_dimension_numbers<[1], [0], [0], [1], [0, 0, 1, 1], [], []>} : vector<8x32xf32>, vector<32x32xf32>, vector<8x32xf32> -> vector<8x32xf32>
    %37 = arith.addf %33, %36 : vector<8x32xf32>
    %38 = vector.broadcast %14 : vector<1x32xf32> to vector<8x32xf32>
    %39 = arith.addf %37, %38 : vector<8x32xf32>
    %40 = arith.negf %39 : vector<8x32xf32>
    %41 = math.exp %40 : vector<8x32xf32>
    %cst_29 = arith.constant 1.000000e+00 : f32
    %42 = vector.broadcast %cst_29 : f32 to vector<8x32xf32>
    %43 = arith.addf %42, %41 : vector<8x32xf32>
    %44 = arith.divf %42, %43 : vector<8x32xf32>
    %c2_30 = arith.constant 2 : index
    %c0_31 = arith.constant 0 : index
    %c0_32 = arith.constant 0 : index
    %45 = vector.load %arg5[%c2_30, %c0_31, %c0_32] : memref<3x32x32xf32, #tpu.memory_space<vmem>>, vector<1x32x32xf32>
    %46 = vector.shape_cast %45 : vector<1x32x32xf32> to vector<32x32xf32>
    %cst_33 = arith.constant dense<0.000000e+00> : vector<8x32xf32>
    %47 = tpu.matmul %11, %46, %cst_33 {dimension_numbers = #tpu.dot_dimension_numbers<[1], [0], [0], [1], [0, 0, 1, 1], [], []>} : vector<8x32xf32>, vector<32x32xf32>, vector<8x32xf32> -> vector<8x32xf32>
    %48 = vector.broadcast %15 : vector<1x32xf32> to vector<8x32xf32>
    %49 = arith.addf %47, %48 : vector<8x32xf32>
    %c2_34 = arith.constant 2 : index
    %c0_35 = arith.constant 0 : index
    %c0_36 = arith.constant 0 : index
    %50 = vector.load %arg6[%c2_34, %c0_35, %c0_36] : memref<3x32x32xf32, #tpu.memory_space<vmem>>, vector<1x32x32xf32>
    %51 = vector.shape_cast %50 : vector<1x32x32xf32> to vector<32x32xf32>
    %cst_37 = arith.constant dense<0.000000e+00> : vector<8x32xf32>
    %52 = tpu.matmul %12, %51, %cst_37 {dimension_numbers = #tpu.dot_dimension_numbers<[1], [0], [0], [1], [0, 0, 1, 1], [], []>} : vector<8x32xf32>, vector<32x32xf32>, vector<8x32xf32> -> vector<8x32xf32>
    %53 = vector.broadcast %16 : vector<1x32xf32> to vector<8x32xf32>
    %54 = arith.addf %52, %53 : vector<8x32xf32>
    %55 = arith.mulf %30, %54 : vector<8x32xf32>
    %56 = arith.addf %49, %55 : vector<8x32xf32>
    %57 = math.tanh %56 : vector<8x32xf32>
    %cst_38 = arith.constant 1.000000e+00 : f32
    %58 = vector.broadcast %cst_38 : f32 to vector<8x32xf32>
    %59 = arith.subf %58, %44 : vector<8x32xf32>
    %60 = arith.mulf %59, %57 : vector<8x32xf32>
    %61 = arith.mulf %44, %12 : vector<8x32xf32>
    %62 = arith.addf %60, %61 : vector<8x32xf32>
    %c0_39 = arith.constant 0 : index
    %c0_40 = arith.constant 0 : index
    %63 = vector.load %arg14[%c0_39, %c0_40] : memref<8x32xf32, #tpu.memory_space<vmem>>, vector<8x32xf32>
    tpu.vector_store %arg14[%c0_39, %c0_40], %62 {strides = array<i32>} : memref<8x32xf32, #tpu.memory_space<vmem>>, vector<8x32xf32>,
    %c0_41 = arith.constant 0 : index
    %c0_42 = arith.constant 0 : index
    %64 = vector.load %arg13[%c0_41, %c0_42] : memref<8x32xf32, #tpu.memory_space<vmem>>, vector<8x32xf32>
    tpu.vector_store %arg13[%c0_41, %c0_42], %62 {strides = array<i32>} : memref<8x32xf32, #tpu.memory_space<vmem>>, vector<8x32xf32>,
    %c0_43 = arith.constant 0 : index
    %c0_44 = arith.constant 0 : index
    %c0_45 = arith.constant 0 : index
    %65 = vector.load %arg3[%c0_43, %c0_44, %c0_45] : memref<8x8x32xf32, #tpu.memory_space<vmem>>, vector<8x8x32xf32>
    %66 = vector.shape_cast %62 : vector<8x32xf32> to vector<8x1x32xf32>
    %67 = vector.broadcast %66 : vector<8x1x32xf32> to vector<8x8x32xf32>
    %68 = arith.mulf %67, %65 : vector<8x8x32xf32>
    %cst_46 = arith.constant dense<0.000000e+00> : vector<8x8xf32>
    %69 = vector.multi_reduction <add>, %68, %cst_46 [2] : vector<8x8x32xf32> to vector<8x8xf32>
    %cst_47 = arith.constant dense<0xFF800000> : vector<8xf32>
    %70 = vector.multi_reduction <maximumf>, %69, %cst_47 [1] : vector<8x8xf32> to vector<8xf32>
    %71 = vector.shape_cast %70 : vector<8xf32> to vector<8x1xf32>
    %72 = vector.broadcast %71 : vector<8x1xf32> to vector<8x8xf32>
    %73 = arith.subf %69, %72 : vector<8x8xf32>
    %74 = math.exp %73 : vector<8x8xf32>
    %cst_48 = arith.constant dense<0.000000e+00> : vector<8xf32>
    %75 = vector.multi_reduction <add>, %74, %cst_48 [1] : vector<8x8xf32> to vector<8xf32>
    %76 = vector.shape_cast %75 : vector<8xf32> to vector<8x1xf32>
    %77 = vector.broadcast %76 : vector<8x1xf32> to vector<8x8xf32>
    %78 = arith.divf %74, %77 : vector<8x8xf32>
    %79 = vector.shape_cast %78 : vector<8x8xf32> to vector<8x8x1xf32>
    %80 = vector.broadcast %79 : vector<8x8x1xf32> to vector<8x8x32xf32>
    %81 = arith.mulf %80, %65 : vector<8x8x32xf32>
    %cst_49 = arith.constant dense<0.000000e+00> : vector<8x32xf32>
    %82 = vector.multi_reduction <add>, %81, %cst_49 [1] : vector<8x8x32xf32> to vector<8x32xf32>
    %c0_50 = arith.constant 0 : index
    %c0_51 = arith.constant 0 : index
    %c0_52 = arith.constant 0 : index
    %83 = vector.load %arg8[%c0_50, %c0_51, %c0_52] : memref<2x32x32xf32, #tpu.memory_space<vmem>>, vector<1x32x32xf32>
    %84 = vector.shape_cast %83 : vector<1x32x32xf32> to vector<32x32xf32>
    %cst_53 = arith.constant dense<0.000000e+00> : vector<8x32xf32>
    %85 = tpu.matmul %62, %84, %cst_53 {dimension_numbers = #tpu.dot_dimension_numbers<[1], [0], [0], [1], [0, 0, 1, 1], [], []>} : vector<8x32xf32>, vector<32x32xf32>, vector<8x32xf32> -> vector<8x32xf32>
    %c1_54 = arith.constant 1 : index
    %c0_55 = arith.constant 0 : index
    %c0_56 = arith.constant 0 : index
    %86 = vector.load %arg8[%c1_54, %c0_55, %c0_56] : memref<2x32x32xf32, #tpu.memory_space<vmem>>, vector<1x32x32xf32>
    %87 = vector.shape_cast %86 : vector<1x32x32xf32> to vector<32x32xf32>
    %cst_57 = arith.constant dense<0.000000e+00> : vector<8x32xf32>
    %88 = tpu.matmul %82, %87, %cst_57 {dimension_numbers = #tpu.dot_dimension_numbers<[1], [0], [0], [1], [0, 0, 1, 1], [], []>} : vector<8x32xf32>, vector<32x32xf32>, vector<8x32xf32> -> vector<8x32xf32>
    %89 = arith.addf %85, %88 : vector<8x32xf32>
    %c0_58 = arith.constant 0 : index
    %c0_59 = arith.constant 0 : index
    %90 = vector.load %arg9[%c0_58, %c0_59] : memref<1x32xf32, #tpu.memory_space<vmem>>, vector<1x32xf32>
    %91 = vector.broadcast %90 : vector<1x32xf32> to vector<8x32xf32>
    %92 = arith.addf %89, %91 : vector<8x32xf32>
    %93 = math.tanh %92 : vector<8x32xf32>
    %c0_60 = arith.constant 0 : index
    %c0_61 = arith.constant 0 : index
    %94 = vector.load %arg10[%c0_60, %c0_61] : memref<32x128xf32, #tpu.memory_space<vmem>>, vector<32x128xf32>
    %cst_62 = arith.constant dense<0.000000e+00> : vector<8x128xf32>
    %95 = tpu.matmul %93, %94, %cst_62 {dimension_numbers = #tpu.dot_dimension_numbers<[1], [0], [0], [1], [0, 0, 1, 1], [], []>} : vector<8x32xf32>, vector<32x128xf32>, vector<8x128xf32> -> vector<8x128xf32>
    %c0_63 = arith.constant 0 : index
    %c0_64 = arith.constant 0 : index
    %96 = vector.load %arg11[%c0_63, %c0_64] : memref<1x128xf32, #tpu.memory_space<vmem>>, vector<1x128xf32>
    %97 = vector.broadcast %96 : vector<1x128xf32> to vector<8x128xf32>
    %98 = arith.addf %95, %97 : vector<8x128xf32>
    %cst_65 = arith.constant dense<0xFF800000> : vector<8xf32>
    %99 = vector.multi_reduction <maximumf>, %98, %cst_65 [1] : vector<8x128xf32> to vector<8xf32>
    %100 = vector.shape_cast %99 : vector<8xf32> to vector<8x1xf32>
    %101 = vector.broadcast %100 : vector<8x1xf32> to vector<8x128xf32>
    %102 = arith.subf %98, %101 : vector<8x128xf32>
    %103 = math.exp %102 : vector<8x128xf32>
    %cst_66 = arith.constant dense<0.000000e+00> : vector<8xf32>
    %104 = vector.multi_reduction <add>, %103, %cst_66 [1] : vector<8x128xf32> to vector<8xf32>
    %105 = vector.shape_cast %104 : vector<8xf32> to vector<8x1xf32>
    %106 = vector.broadcast %105 : vector<8x1xf32> to vector<8x128xf32>
    %107 = arith.divf %103, %106 : vector<8x128xf32>
    %c0_67 = arith.constant 0 : index
    %c0_68 = arith.constant 0 : index
    %c0_69 = arith.constant 0 : index
    %108 = vector.load %arg12[%c0_67, %c0_68, %c0_69] : memref<1x8x128xf32, #tpu.memory_space<vmem>>, vector<1x8x128xf32>
    %109 = vector.shape_cast %108 : vector<1x8x128xf32> to vector<8x128xf32>
    %110 = vector.shape_cast %107 : vector<8x128xf32> to vector<1x8x128xf32>
    tpu.vector_store %arg12[%c0_67, %c0_68, %c0_69], %110 {strides = array<i32>} : memref<1x8x128xf32, #tpu.memory_space<vmem>>, vector<1x8x128xf32>,
    return
  }
  func.func @transform_0(%arg0: i32) -> (i32, i32, i32) {
    %c0_i32 = arith.constant 0 : i32
    %c0_i32_0 = arith.constant 0 : i32
    %c0_i32_1 = arith.constant 0 : i32
    return %arg0, %c0_i32, %c0_i32_0 : i32, i32, i32
  }
  func.func @transform_1(%arg0: i32) -> (i32, i32) {
    %c0_i32 = arith.constant 0 : i32
    %c0_i32_0 = arith.constant 0 : i32
    %c0_i32_1 = arith.constant 0 : i32
    return %c0_i32, %c0_i32_0 : i32, i32
  }
  func.func @transform_2(%arg0: i32) -> (i32, i32, i32) {
    %c0_i32 = arith.constant 0 : i32
    %c0_i32_0 = arith.constant 0 : i32
    %c0_i32_1 = arith.constant 0 : i32
    %c0_i32_2 = arith.constant 0 : i32
    return %c0_i32, %c0_i32_0, %c0_i32_1 : i32, i32, i32
  }
  func.func @transform_3(%arg0: i32) -> (i32, i32) {
    %c0_i32 = arith.constant 0 : i32
    %c0_i32_0 = arith.constant 0 : i32
    %c0_i32_1 = arith.constant 0 : i32
    return %c0_i32, %c0_i32_0 : i32, i32
  }
  func.func @transform_4(%arg0: i32) -> (i32, i32, i32) {
    %c0_i32 = arith.constant 0 : i32
    %c0_i32_0 = arith.constant 0 : i32
    %c0_i32_1 = arith.constant 0 : i32
    %c0_i32_2 = arith.constant 0 : i32
    return %c0_i32, %c0_i32_0, %c0_i32_1 : i32, i32, i32
  }
  func.func @transform_5(%arg0: i32) -> (i32, i32, i32) {
    %c0_i32 = arith.constant 0 : i32
    %c0_i32_0 = arith.constant 0 : i32
    %c0_i32_1 = arith.constant 0 : i32
    %c0_i32_2 = arith.constant 0 : i32
    return %c0_i32, %c0_i32_0, %c0_i32_1 : i32, i32, i32
  }
  func.func @transform_6(%arg0: i32) -> (i32, i32) {
    %c0_i32 = arith.constant 0 : i32
    %c0_i32_0 = arith.constant 0 : i32
    %c0_i32_1 = arith.constant 0 : i32
    return %c0_i32, %c0_i32_0 : i32, i32
  }
  func.func @transform_7(%arg0: i32) -> (i32, i32, i32) {
    %c0_i32 = arith.constant 0 : i32
    %c0_i32_0 = arith.constant 0 : i32
    %c0_i32_1 = arith.constant 0 : i32
    %c0_i32_2 = arith.constant 0 : i32
    return %c0_i32, %c0_i32_0, %c0_i32_1 : i32, i32, i32
  }
  func.func @transform_8(%arg0: i32) -> (i32, i32) {
    %c0_i32 = arith.constant 0 : i32
    %c0_i32_0 = arith.constant 0 : i32
    %c0_i32_1 = arith.constant 0 : i32
    return %c0_i32, %c0_i32_0 : i32, i32
  }
  func.func @transform_9(%arg0: i32) -> (i32, i32) {
    %c0_i32 = arith.constant 0 : i32
    %c0_i32_0 = arith.constant 0 : i32
    %c0_i32_1 = arith.constant 0 : i32
    return %c0_i32, %c0_i32_0 : i32, i32
  }
  func.func @transform_10(%arg0: i32) -> (i32, i32) {
    %c0_i32 = arith.constant 0 : i32
    %c0_i32_0 = arith.constant 0 : i32
    %c0_i32_1 = arith.constant 0 : i32
    return %c0_i32, %c0_i32_0 : i32, i32
  }
  func.func @transform_11(%arg0: i32) -> (i32, i32, i32) {
    %c0_i32 = arith.constant 0 : i32
    %c0_i32_0 = arith.constant 0 : i32
    %c0_i32_1 = arith.constant 0 : i32
    return %arg0, %c0_i32, %c0_i32_0 : i32, i32, i32
  }
  func.func @transform_12(%arg0: i32) -> (i32, i32) {
    %c0_i32 = arith.constant 0 : i32
    %c0_i32_0 = arith.constant 0 : i32
    %c0_i32_1 = arith.constant 0 : i32
    return %c0_i32, %c0_i32_0 : i32, i32
  }
}

</mosaic_0001>

<bundles_post_ra>
// kernel: luong_decoder_decode.1
= control target key start
LH: loop header
LB: loop body
LE: loop exit
PB: predicated region body
PF: predicated region fallthrough
CT: control target
= control target key end

     0   :  { %s2294_s21 = smov 0   ;;  %s2747_s0 = inlined_call_operand.vmem [shape: s32[6,8,1], index: 0, kind: input, shape index: {}]   ;;  %s2748_s1 = inlined_call_operand.vmem [shape: f32[8,32], index: 1, kind: input, shape index: {}]   ;;  %s2749_s2 = inlined_call_operand.vmem [shape: f32[8,8,32], index: 2, kind: input, shape index: {}]   ;;  %s2750_s3 = inlined_call_operand.vmem [shape: f32[128,32], index: 3, kind: input, shape index: {}]   ;;  %s2751_s4 = inlined_call_operand.vmem [shape: f32[3,32,32], index: 4, kind: input, shape index: {}]   ;;  %s2752_s5 = inlined_call_operand.vmem [shape: f32[3,32,32], index: 5, kind: input, shape index: {}]   ;;  %s2753_s6 = inlined_call_operand.vmem [shape: f32[4,32], index: 6, kind: input, shape index: {}]   ;;  %s2754_s7 = inlined_call_operand.vmem [shape: f32[2,32,32], index: 7, kind: input, shape index: {}]   ;;  %s2755_s8 = inlined_call_operand.vmem [shape: f32[1,32], index: 8, kind: input, shape index: {}]   ;;  %s2756_s9 = inlined_call_operand.vmem [shape: f32[32,128], index: 9, kind: input, shape index: {}]   ;;  %s2757_s10 = inlined_call_operand.vmem [shape: f32[1,128], index: 10, kind: input, shape index: {}]   ;;  %s2758_s11 = inlined_call_operand.vmem [shape: f32[6,8,128], index: 11, kind: output, shape index: {0}]   ;;  %s2759_s12 = inlined_call_operand.vmem [shape: f32[8,32], index: 12, kind: output, shape index: {1}]  }
   0x1 LB: > { %s1828_s22 = sadd.s32 4294967295, %s2221_s21   ;;  %p1832_p0 = scmp.ge.s32.totalorder %s2221_s21, 1  ;;  %s2221_s21 = sphi %s2294_s21, %s23_s21  }
   0x2   : > { %p359_p1 = scmp.lt.s32.totalorder %s2221_s21, 7 }
   0x4   : > { %p360_p2 = pnand %p1832_p0, %p359_p1 }
   0x5   : > { %p399_p3 = scmp.lt.s32.totalorder (!%p360_p2), %s1828_s22, 5  ;;  %p1835_p4 = scmp.ne.s32.totalorder (!%p360_p2), %s1828_s22, 0 }
   0x6   : > { %363 = sbr.rel (%p360_p2) target bundleno = 2199 (0x897), region = 64 }
   0xd   : > { %s400_s23 = scalar_select %p399_p3, %s1828_s22, 5 }
   0xe   : > { %410 = sbr.rel (%p1835_p4) target bundleno = 21 (0x15), region = 68  ;;  %v411_v0 = vld [vmem:[%s2748_s1] sm:$0xff] (!%p1835_p4)  ;;  %vm412_vm0 = vcmask (!%p1835_p4), 261120  }
   0xf   : > { %s1833_s24 = sshll.u32 %s400_s23, 3  ;;  %413 = vst.msk [vmem:[#allocation2] sm:$0xff] (!%p1835_p4), %vm412_vm0, %v411_v0 }
  0x10   : > { %s402_s27 = scalar_lea.vmem %s2747_s0, %s1833_s24  ;;  %s2308_s30 = scalar_lea.vmem %s2758_s11, %s1833_s24 }
  0x15 PF: > { %v414_v1 = vld [vmem:[%s402_s27] sm:$0xff]  ;;  %v424_v3 = vld [vmem:[%s2750_s3 + $0x8] sm:$0xff]  ;;  %v2223_v4 = vmov 0   ;;  %v2224_v5 = vmov 0.0|0.0   ;;  %v425_v7 = vld [vmem:[%s2750_s3 + $0x10] sm:$0xff]  ;;  %vm2225_vm1 = vmmov 0   ;;  %v415_v42 = vlaneseq }
  0x16   : > { %v423_v2 = vld [vmem:[%s2750_s3] sm:$0xff]  ;;  %2165 = vset.pattern.permute.xlu0 %v2223_v4  ;;  %2073 = vmatprep.subr.bf16.mxu0 %v2224_v5  ;;  %v426_v8 = vld [vmem:[%s2750_s3 + $0x18] sm:$0xff]  ;;  %v2226_v9 = vmov 0.0   ;;  %v428_v12 = vld [vmem:[%s2750_s3 + $0x28] sm:$0xff]  ;;  %vm522_vm2 = vcmask 261120   ;;  %v2227_v50 = vmov 1.0  }
  0x17   : > { %v2074_v6 = vpack.c.bf16 %v424_v3, %v423_v2  ;;  %418 = vperm.xlu0 %2165, %v414_v1   ;;  %1971 = vmatprep.mubr.msk.f32.mxu0 %vm2225_vm1, %v2226_v9  ;;  %v2077_v10 = vpack.c.bf16 %v426_v8, %v425_v7  ;;  %v427_v11 = vld [vmem:[%s2750_s3 + $0x20] sm:$0xff]  ;;  %v519_v14 = vld [vmem:[%s2752_s5 + $0x8] sm:$0xff]  ;;  %v520_v15 = vld [vmem:[%s2752_s5 + $0x10] sm:$0xff]  ;;  %v2416_v45 = vand.u32 127, %v415_v42  ;;  %vm1178_vm4 = vcmask 1041409  }
  0x18   : > { %2097 = vmatprep.subr.bf16.mxu1 %v2224_v5  ;;  %1982 = vmatprep.mubr.msk.f32.mxu1 %vm2225_vm1, %v2226_v9  ;;  %v518_v13 = vld [vmem:[%s2752_s5] sm:$0xff]  ;;  %v521_v16 = vld [vmem:[%s2752_s5 + $0x18] sm:$0xff]  ;;  %v2080_v17 = vpack.c.bf16 %v428_v12, %v427_v11  ;;  %v429_v19 = vld [vmem:[%s2750_s3 + $0x30] sm:$0xff]  ;;  %vm1180_vm5 = vcmask 1042434   ;;  %vm1182_vm6 = vcmask 1043459   ;;  %vm1184_vm7 = vcmask 1044484  }
  0x19   : > { %2075 = vmatpush3.bf16.msra.mxu0 %v2074_v6  ;;  %2166 = vset.pattern.permute.xlu1 %v2223_v4  ;;  %v2098_v18 = vpack.c.bf16 %v519_v14, %v518_v13  ;;  %v430_v20 = vld [vmem:[%s2750_s3 + $0x38] sm:$0xff]  ;;  %v2101_v21 = vpack.c.bf16 %v521_v16, %v520_v15  ;;  %v514_v22 = vld [vmem:[%s2751_s4] sm:$0xff]  ;;  %v515_v23 = vld [vmem:[%s2751_s4 + $0x8] sm:$0xff]  ;;  %vm1186_vm8 = vcmask 1045509   ;;  %vm1188_vm9 = vcmask 1046534  }
  0x1a   : > { %2076 = vmatprep.subr.bf16.mxu0 %v2224_v5  ;;  %v2083_v24 = vpack.c.bf16 %v430_v20, %v429_v19  ;;  %v431_v25 = vld [vmem:[%s2750_s3 + $0x40] sm:$0xff]  ;;  %v432_v26 = vld [vmem:[%s2750_s3 + $0x48] sm:$0xff]  ;;  %v2104_v28 = vpack.c.bf16 %v515_v23, %v514_v22  ;;  %v516_v29 = vld [vmem:[%s2751_s4 + $0x10] sm:$0xff]  ;;  %vm1190_vm10 = vcmask 1047559   ;;  %vm1193_vm11 = vcmask 64512  }
  0x1b   : > { %2099 = vmatpush3.bf16.msra.mxu1 %v2098_v18  ;;  %v2371_v27 = vld [vmem:[#allocation2] sm:$0xff]  ;;  %v517_v30 = vld [vmem:[%s2751_s4 + $0x18] sm:$0xff]  ;;  %v2086_v31 = vpack.c.bf16 %v432_v26, %v431_v25  ;;  %v433_v32 = vld [vmem:[%s2750_s3 + $0x50] sm:$0xff] }
  0x1c   : > { %2100 = vmatprep.subr.bf16.mxu1 %v2224_v5  ;;  %v434_v33 = vld [vmem:[%s2750_s3 + $0x58] sm:$0xff]  ;;  %v2107_v34 = vpack.c.bf16 %v517_v30, %v516_v29  ;;  %v435_v36 = vld [vmem:[%s2750_s3 + $0x60] sm:$0xff]  ;;  %v436_v37 = vld [vmem:[%s2750_s3 + $0x68] sm:$0xff] }
  0x1d   : > { %2078 = vmatpush3.bf16.msra.mxu0 %v2077_v10  ;;  %v2089_v35 = vpack.c.bf16 %v434_v33, %v433_v32  ;;  %v2092_v38 = vpack.c.bf16 %v436_v37, %v435_v36  ;;  %v437_v39 = vld [vmem:[%s2750_s3 + $0x70] sm:$0xff]  ;;  %v438_v40 = vld [vmem:[%s2750_s3 + $0x78] sm:$0xff]  ;;  %v1854_v43 = vld [vmem:[%s2751_s4 + $0x40] sm:$0xff] }
  0x1e   : > { %2079 = vmatprep.subr.bf16.mxu0 %v2224_v5  ;;  %v2095_v41 = vpack.c.bf16 %v438_v40, %v437_v39  ;;  %v1855_v44 = vld [vmem:[%s2751_s4 + $0x48] sm:$0xff]  ;;  %v1856_v48 = vld [vmem:[%s2751_s4 + $0x50] sm:$0xff]  ;;  %v1857_v49 = vld [vmem:[%s2751_s4 + $0x58] sm:$0xff] }
  0x1f   : > { %2102 = vmatpush3.bf16.msra.mxu1 %v2101_v21  ;;  %v2122_v46 = vpack.c.bf16 %v1855_v44, %v1854_v43  ;;  %v2125_v51 = vpack.c.bf16 %v1857_v49, %v1856_v48  ;;  %v1846_v54 = vld [vmem:[%s2752_s5 + $0x20] sm:$0xff]  ;;  %v1847_v55 = vld [vmem:[%s2752_s5 + $0x28] sm:$0xff]  ;;  %v1848_v57 = vld [vmem:[%s2752_s5 + $0x30] sm:$0xff] }
  0x20   : > { %2103 = vmatprep.subr.bf16.mxu1 %v2224_v5  ;;  %v2110_v56 = vpack.c.bf16 %v1847_v55, %v1846_v54  ;;  %v1849_v58 = vld [vmem:[%s2752_s5 + $0x38] sm:$0xff]  ;;  %v1842_v62 = vld [vmem:[%s2751_s4 + $0x20] sm:$0xff]  ;;  %v1843_v63 = vld [vmem:[%s2751_s4 + $0x28] sm:$0xff] }
  0x21   : > { %2081 = vmatpush3.bf16.msra.mxu0 %v2080_v17  ;;  %v2113_v61 = vpack.c.bf16 %v1849_v58, %v1848_v57  ;;  %v2116_v0 = vpack.c.bf16 %v1843_v63, %v1842_v62  ;;  %v1844_v1 = vld [vmem:[%s2751_s4 + $0x30] sm:$0xff]  ;;  %v1845_v2 = vld [vmem:[%s2751_s4 + $0x38] sm:$0xff]  ;;  %v1860_v4 = vld [vmem:[%s2752_s5 + $0x40] sm:$0xff] }
  0x22   : > { %2082 = vmatprep.subr.bf16.mxu0 %v2224_v5  ;;  %1983 = vmatmul.mubr.msk.f32.vlgmr.msra.gmra.mrb[0].mxu1 %vm522_vm2, %v2371_v27  ;;  %v2119_v3 = vpack.c.bf16 %v1845_v2, %v1844_v1  ;;  %v1861_v6 = vld [vmem:[%s2752_s5 + $0x48] sm:$0xff]  ;;  %v1862_v8 = vld [vmem:[%s2752_s5 + $0x50] sm:$0xff]  ;;  %v1863_v10 = vld [vmem:[%s2752_s5 + $0x58] sm:$0xff] }
  0x23   : > { %2105 = vmatpush3.bf16.msra.mxu1 %v2104_v28  ;;  %1993 = vmatprep.mubr.msk.f32.mxu1 %vm2225_vm1, %v2226_v9  ;;  %v2128_v7 = vpack.c.bf16 %v1861_v6, %v1860_v4  ;;  %v2131_v11 = vpack.c.bf16 %v1863_v10, %v1862_v8  ;;  %v1498_v12 = vld [vmem:[%s2754_s7] sm:$0xff]  ;;  %v1499_v13 = vld [vmem:[%s2754_s7 + $0x8] sm:$0xff]  ;;  %v1500_v14 = vld [vmem:[%s2754_s7 + $0x10] sm:$0xff] }
  0x24   : > { %2106 = vmatprep.subr.bf16.mxu1 %v2224_v5  ;;  %v2140_v15 = vpack.c.bf16 %v1499_v13, %v1498_v12  ;;  %v1501_v16 = vld [vmem:[%s2754_s7 + $0x18] sm:$0xff]  ;;  %v1840_v18 = vld [vmem:[%s2753_s6] ss:$0 sm:$0xff]  ;;  %v1852_v29 = vld [vmem:[%s2753_s6 + $0x1] ss:$0 sm:$0xff] }
  0x25   : > { %2084 = vmatpush3.bf16.msra.mxu0 %v2083_v24  ;;  %v2143_v17 = vpack.c.bf16 %v1501_v16, %v1500_v14  ;;  %v1864_v37 = vld [vmem:[%s2753_s6 + $0x3] ss:$0 sm:$0xff]  ;;  %v2536_v6 = vld [vmem:[%s2749_s2 + $0x8] sm:$0xff]  ;;  %v2544_v12 = vld [vmem:[%s2749_s2 + $0x10] sm:$0xff] }
  0x26   : > { %2085 = vmatprep.subr.bf16.mxu0 %v2224_v5  ;;  %v2530_v1 = vld [vmem:[%s2749_s2] sm:$0xff] }
  0x27   : > { %2108 = vmatpush3.bf16.msra.mxu1 %v2107_v34 }
  0x28   : > { %2109 = vmatprep.subr.bf16.mxu1 %v2224_v5 }
  0x29   : > { %2087 = vmatpush3.bf16.msra.mxu0 %v2086_v31 }
  0x2a   : > { %2088 = vmatprep.subr.bf16.mxu0 %v2224_v5 }
  0x2d   : > { %2090 = vmatpush3.bf16.msra.mxu0 %v2089_v35 }
  0x2e   : > { %2091 = vmatprep.subr.bf16.mxu0 %v2224_v5 }
  0x31   : > { %2093 = vmatpush3.bf16.msra.mxu0 %v2092_v38 }
  0x32   : > { %2094 = vmatprep.subr.bf16.mxu0 %v2224_v5 }
  0x35   : > { %2096 = vmatpush3.bf16.msra.mxu0 %v2095_v41  ;;  %v1858_v41 = vld [vmem:[%s2753_s6 + $0x2] ss:$0 sm:$0xff] }
  0x36   : > { %2121 = vmatprep.subr.bf16.mxu0 %v2224_v5 }
  0x96   : > { %v419_v47 = vpop.permute.xlu0 %418 }
  0x97   : > { %vm420_vm3 = vcmp.eq.s32.totalorder %v2416_v45, %v419_v47 }
  0x98   : > { %1972 = vmatmul.mubr.msk.f32.vlgmr.msra.gmra.mrb[0].mxu0 %vm420_vm3, %v2227_v50  ;;  %v2228_v50 = vmov 1966171168  }
  0x99   : > { %2123 = vmatpush3.bf16.msra.mxu0 %v2122_v46  ;;  %2026 = vmatprep.mubr.msk.f32.mxu0 %vm2225_vm1, %v2226_v9 }
  0x9a   : > { %2124 = vmatprep.subr.bf16.mxu0 %v2224_v5 }
  0x9d   : > { %2126 = vmatpush3.bf16.msra.mxu0 %v2125_v51  ;;  %v1019_v51 = vunpack.c.l.s4 %v2228_v50 }
  0x9e   : > { %2133 = vmatprep.subr.bf16.mxu0 %v2224_v5 }
  0xf5   : > { %v592_v52 = vpop.f32.mrb[0].mxu1 }
  0xf6   : > { %v1984_v53 = vpop.f32.mrb[1].mxu1 }
  0xf7   : > { %v1020_v53 = vunpack.c.0.s8 %v1019_v51 }
 0x16b   : > { %v505_v59 = vpop.f32.mrb[0].mxu0 }
 0x16c   : > { %v1973_v60 = vpop.f32.mrb[1].mxu0  ;;  %1994 = vmatmul.mubr.msk.f32.vlgmr.msra.gmra.mrb[2].mxu1 %vm522_vm2, %v505_v59  ;;  %2027 = vmatmul.mubr.msk.f32.vlgmr.msra.gmra.mrb[2].mxu0 %vm522_vm2, %v505_v59 }
 0x16d   : > { %2111 = vmatpush3.bf16.msra.mxu1 %v2110_v56  ;;  %2004 = vmatprep.mubr.msk.f32.mxu1 %vm2225_vm1, %v2226_v9 }
 0x16e   : > { %2112 = vmatprep.subr.bf16.mxu1 %v2224_v5  ;;  %2048 = vmatprep.mubr.msk.f32.mxu0 %vm2225_vm1, %v2226_v9 }
 0x171   : > { %2114 = vmatpush3.bf16.msra.mxu1 %v2113_v61 }
 0x172   : > { %2115 = vmatprep.subr.bf16.mxu1 %v2224_v5 }
 0x174   : > { %2005 = vmatmul.mubr.msk.f32.vlgmr.msra.gmra.mrb[4].mxu1 %vm522_vm2, %v2371_v27 }
 0x175   : > { %2117 = vmatpush3.bf16.msra.mxu1 %v2116_v0  ;;  %2015 = vmatprep.mubr.msk.f32.mxu1 %vm2225_vm1, %v2226_v9 }
 0x176   : > { %2118 = vmatprep.subr.bf16.mxu1 %v2224_v5 }
 0x179   : > { %2120 = vmatpush3.bf16.msra.mxu1 %v2119_v3 }
 0x17a   : > { %2127 = vmatprep.subr.bf16.mxu1 %v2224_v5 }
 0x17c   : > { %2016 = vmatmul.mubr.msk.f32.vlgmr.msra.gmra.mrb[6].mxu1 %vm522_vm2, %v505_v59 }
 0x17d   : > { %2129 = vmatpush3.bf16.msra.mxu1 %v2128_v7  ;;  %2037 = vmatprep.mubr.msk.f32.mxu1 %vm2225_vm1, %v2226_v9 }
 0x17e   : > { %2130 = vmatprep.subr.bf16.mxu1 %v2224_v5 }
 0x181   : > { %2132 = vmatpush3.bf16.msra.mxu1 %v2131_v11 }
 0x182   : > { %2139 = vmatprep.subr.bf16.mxu1 %v2224_v5 }
 0x184   : > { %2038 = vmatmul.mubr.msk.f32.vlgmr.msra.gmra.mrb[8].mxu1 %vm522_vm2, %v2371_v27 }
 0x185   : > { %2059 = vmatprep.mubr.msk.f32.mxu1 %vm2225_vm1, %v2226_v9  ;;  %2141 = vmatpush3.bf16.msra.mxu1 %v2140_v15 }
 0x186   : > { %2142 = vmatprep.subr.bf16.mxu1 %v2224_v5 }
 0x189   : > { %2144 = vmatpush3.bf16.msra.mxu1 %v2143_v17 }
 0x23f   : > { %v665_v19 = vpop.f32.mrb[2].mxu1  ;;  %v916_v20 = vpop.f32.mrb[2].mxu0 }
 0x240   : > { %v666_v21 = vadd.f32 %v665_v19, %v592_v52  ;;  %v1995_v22 = vpop.f32.mrb[3].mxu1  ;;  %v2028_v23 = vpop.f32.mrb[3].mxu0  ;;  %v917_v44 = vadd.f32 %v1858_v41, %v916_v20  ;;  %v2514_v52 = vshrl.u32 %v415_v42, 7  ;;  %v2554_v20 = vld [vmem:[%s2749_s2 + $0x20] sm:$0xff] }
 0x242   : > { %v673_v24 = vadd.f32 %v1840_v18, %v666_v21  ;;  %v1023_v59 = vsub.s32 %v1020_v53, %v2514_v52  ;;  %v2525_v61 = vsub.s32 0, %v2514_v52  ;;  %v2595_v50 = vsub.s32 %v2416_v45, %v2514_v52 }
 0x244   : > { %v1841_v25 = vmul.f32 -1.442695, %v673_v24 }
 0x246   : > { %2167 = vpow2.f32 %v1841_v25  ;;  %v2562_v25 = vld [vmem:[%s2749_s2 + $0x18] sm:$0xff] }
 0x247   : > { %v756_v26 = vpop.f32.mrb[4].mxu1 }
 0x248   : > { %v2006_v28 = vpop.f32.mrb[5].mxu1 }
 0x24f   : > { %v826_v30 = vpop.f32.mrb[6].mxu1 }
 0x250   : > { %v2168_v31 = vpop.eup %2167  ;;  %v827_v32 = vadd.f32 %v826_v30, %v756_v26  ;;  %v2017_v33 = vpop.f32.mrb[7].mxu1 }
 0x251   : > { %v677_v34 = vadd.f32 1.0, %v2168_v31  ;;  %v2570_v31 = vld [vmem:[%s2749_s2 + $0x28] sm:$0xff] }
 0x252   : > { %v834_v35 = vadd.f32 %v1852_v29, %v827_v32 }
 0x253   : > { %2169 = vrcp.f32 %v677_v34 }
 0x254   : > { %v1853_v36 = vmul.f32 -1.442695, %v834_v35 }
 0x256   : > { %2171 = vpow2.f32 %v1853_v36  ;;  %v2578_v36 = vld [vmem:[%s2749_s2 + $0x30] sm:$0xff] }
 0x257   : > { %v995_v38 = vpop.f32.mrb[8].mxu1 }
 0x258   : > { %v2039_v39 = vpop.f32.mrb[9].mxu1  ;;  %v996_v40 = vadd.f32 %v1864_v37, %v995_v38 }
 0x25d   : > { %v2170_v43 = vpop.eup %2169 }
 0x25e   : > { %v999_v46 = vmul.f32 %v2170_v43, %v996_v40  ;;  %v2586_v40 = vld [vmem:[%s2749_s2 + $0x38] sm:$0xff] }
 0x260   : > { %v2172_v47 = vpop.eup %2171  ;;  %v1000_v48 = vadd.f32 %v999_v46, %v917_v44 }
 0x261   : > { %v838_v49 = vadd.f32 1.0, %v2172_v47 }
 0x263   : > { %2173 = vrcp.f32 %v838_v49 }
 0x264   : > { %2175 = vtanh.f32 %v1000_v48 }
 0x26d   : > { %v2174_v54 = vpop.eup %2173 }
 0x26e   : > { %v1002_v55 = vsub.f32 1.0, %v2174_v54  ;;  %v2176_v56 = vpop.eup %2175  ;;  %v1004_v58 = vmul.f32 %v2174_v54, %v2371_v27 }
 0x270   : > { %v1003_v57 = vmul.f32 %v2176_v56, %v1002_v55 }
 0x272   : > { %v1005_v60 = vadd.f32 %v1004_v58, %v1003_v57 }
 0x274   : > { %1006 = vst.msk [vmem:[#allocation2] sm:$0xff] %vm522_vm2, %v1005_v60  ;;  %1007 = vst.msk [vmem:[%s2759_s12] sm:$0xff] %vm522_vm2, %v1005_v60  ;;  %2060 = vmatmul.mubr.msk.f32.vlgmr.msra.gmra.mrb[10].mxu1 %vm522_vm2, %v1005_v60  ;;  %v1024_v42 = vrot.slane %v1005_v60, %v1023_v59  ;;  %v1017_v62 = vcombine.high %v1005_v60, %v1005_v60 }
 0x276   : > { %v1040_v63 = vrot.slane %v1024_v42, %v1023_v59  ;;  %v1032_v0 = vcombine.high %v1024_v42, %v1024_v42  ;;  %v1031_v27 = vrot.slane %v1017_v62, %v1023_v59 }
 0x278   : > { %v1069_v2 = vrot.slane %v1040_v63, %v2525_v61  ;;  %v1054_v3 = vrot.slane %v1032_v0, %v1023_v59  ;;  %v1062_v4 = vcombine.high %v1040_v63, %v1040_v63  ;;  %v1047_v11 = vrot.slane %v1031_v27, %v1023_v59 }
 0x279   : > { %v1033_v15 = vcombine.high %v1031_v27, %v1031_v27 }
 0x27a   : > { %v1106_v7 = vmul.f32 %v1069_v2, %v2530_v1  ;;  %v1073_v8 = vrot.slane %v1054_v3, %v2525_v61  ;;  %v1077_v10 = vrot.slane %v1062_v4, %v2525_v61  ;;  %v1085_v18 = vrot.slane %v1047_v11, %v2525_v61 }
 0x27b   : > { %v1064_v19 = vcombine.high %v1054_v3, %v1054_v3  ;;  %v1061_v24 = vrot.slane %v1033_v15, %v1023_v59  ;;  %v1063_v30 = vcombine.high %v1047_v11, %v1047_v11  ;;  %v1216_v15 = vsub.s32 4, %v2514_v52 }
 0x27c   : > { %v1114_v13 = vsel %vm522_vm2, %v1106_v7, 0.0  ;;  %v1107_v14 = vmul.f32 %v1073_v8, %v2536_v6  ;;  %v1108_v17 = vmul.f32 %v1077_v10, %v2544_v12  ;;  %v1110_v22 = vmul.f32 %v1085_v18, %v2554_v20 }
 0x27d   : > { %1115 = vadd.xlane.f32.xlu0 %v1114_v13  ;;  %v1081_v23 = vrot.slane %v1064_v19, %v2525_v61  ;;  %v1089_v29 = vrot.slane %v1061_v24, %v2525_v61  ;;  %v1093_v34 = vrot.slane %v1063_v30, %v2525_v61  ;;  %v1065_v35 = vcombine.high %v1061_v24, %v1061_v24 }
 0x27e   : > { %v1117_v16 = vsel %vm522_vm2, %v1107_v14, 0.0  ;;  %v1120_v21 = vsel %vm522_vm2, %v1108_v17, 0.0  ;;  %v1126_v26 = vsel %vm522_vm2, %v1110_v22, 0.0  ;;  %v1204_v13 = vsub.s32 1, %v2514_v52 }
 0x27f   : > { %1118 = vadd.xlane.f32.xlu1 %v1117_v16  ;;  %v1109_v28 = vmul.f32 %v1081_v23, %v2562_v25  ;;  %v1111_v33 = vmul.f32 %v1089_v29, %v2570_v31  ;;  %v1112_v38 = vmul.f32 %v1093_v34, %v2578_v36  ;;  %v1097_v39 = vrot.slane %v1065_v35, %v2525_v61 }
 0x280   : > { %v1208_v14 = vsub.s32 2, %v2514_v52  ;;  %v1212_v16 = vsub.s32 3, %v2514_v52  ;;  %v1224_v17 = vsub.s32 6, %v2514_v52  ;;  %v1220_v23 = vsub.s32 5, %v2514_v52 }
 0x281   : > { %v1123_v32 = vsel %vm522_vm2, %v1109_v28, 0.0  ;;  %v1129_v37 = vsel %vm522_vm2, %v1111_v33, 0.0  ;;  %v1132_v41 = vsel %vm522_vm2, %v1112_v38, 0.0  ;;  %v1113_v43 = vmul.f32 %v1097_v39, %v2586_v40 }
 0x283   : > { %1121 = vadd.xlane.f32.xlu1 %v1120_v21  ;;  %v1135_v44 = vsel %vm522_vm2, %v1113_v43, 0.0 }
 0x287   : > { %1127 = vadd.xlane.f32.xlu1 %v1126_v26 }
 0x28b   : > { %1124 = vadd.xlane.f32.xlu1 %v1123_v32 }
 0x28f   : > { %1130 = vadd.xlane.f32.xlu1 %v1129_v37  ;;  %v1228_v37 = vsub.s32 7, %v2514_v52  ;;  %v1866_v52 = vld [vmem:[%s2754_s7 + $0x20] sm:$0xff] }
 0x293   : > { %1133 = vadd.xlane.f32.xlu1 %v1132_v41 }
 0x297   : > { %1136 = vadd.xlane.f32.xlu1 %v1135_v44 }
 0x30a   : > { %v1116_v51 = vpop.xlane.xlu0 %1115 }
 0x30b   : > { %v1149_v56 = vrot.slane %v1116_v51, %v2595_v50 }
 0x30c   : > { %v1119_v46 = vpop.xlane.xlu1 %1118 }
 0x30d   : > { %v1153_v53 = vrot.slane %v1119_v46, %v2595_v50 }
 0x30f   : > { %v1179_v58 = vsel %vm1178_vm4, %v1153_v53, %v1149_v56 }
 0x310   : > { %v1122_v47 = vpop.xlane.xlu1 %1121 }
 0x311   : > { %v1157_v54 = vrot.slane %v1122_v47, %v2595_v50 }
 0x313   : > { %v1181_v59 = vsel %vm1180_vm5, %v1157_v54, %v1179_v58 }
 0x314   : > { %v1128_v48 = vpop.xlane.xlu1 %1127 }
 0x315   : > { %v1165_v62 = vrot.slane %v1128_v48, %v2595_v50 }
 0x318   : > { %v2591_v49 = vpop.xlane.xlu1 %1124 }
 0x319   : > { %v1161_v57 = vrot.slane %v2591_v49, %v2595_v50 }
 0x31b   : > { %v1183_v60 = vsel %vm1182_vm6, %v1161_v57, %v1181_v59 }
 0x31c   : > { %v1131_v55 = vpop.xlane.xlu1 %1130  ;;  %v1185_v27 = vsel %vm1184_vm7, %v1165_v62, %v1183_v60 }
 0x31d   : > { %v1169_v42 = vrot.slane %v1131_v55, %v2595_v50 }
 0x31f   : > { %v1187_v3 = vsel %vm1186_vm8, %v1169_v42, %v1185_v27 }
 0x320   : > { %v1134_v45 = vpop.xlane.xlu1 %1133 }
 0x321   : > { %v1173_v63 = vrot.slane %v1134_v45, %v2595_v50 }
 0x323   : > { %v1189_v4 = vsel %vm1188_vm9, %v1173_v63, %v1187_v3 }
 0x324   : > { %v1137_v0 = vpop.xlane.xlu1 %1136 }
 0x325   : > { %v1177_v2 = vrot.slane %v1137_v0, %v2595_v50 }
 0x327   : > { %v1191_v7 = vsel %vm1190_vm10, %v1177_v2, %v1189_v4 }
 0x328   : > { %v1194_v8 = vsel %vm1193_vm11, %v1191_v7, -inf }
 0x329   : > { %1195 = vmax.xlane.f32.xlu1 %v1194_v8 }
 0x347   : > { %v2614_v10 = vpop.f32.mrb[10].mxu1 }
 0x348   : > { %v2061_v11 = vpop.f32.mrb[11].mxu1 }
 0x3b6   : > { %v1196_v18 = vpop.xlane.xlu1 %1195 }
 0x3b7   : > { %v1201_v19 = vrot.slane %v1196_v18, %v2525_v61  ;;  %v1205_v21 = vrot.slane %v1196_v18, %v1204_v13  ;;  %v1209_v22 = vrot.slane %v1196_v18, %v1208_v14  ;;  %v1217_v24 = vrot.slane %v1196_v18, %v1216_v15 }
 0x3b8   : > { %v1213_v26 = vrot.slane %v1196_v18, %v1212_v16  ;;  %v1225_v32 = vrot.slane %v1196_v18, %v1224_v17  ;;  %v1221_v38 = vrot.slane %v1196_v18, %v1220_v23 }
 0x3b9   : > { %v1238_v28 = vsub.f32 %v1116_v51, %v1201_v19  ;;  %v1239_v29 = vsub.f32 %v1119_v46, %v1205_v21  ;;  %v1240_v30 = vsub.f32 %v1122_v47, %v1209_v22  ;;  %v1242_v33 = vsub.f32 %v1128_v48, %v1217_v24 }
 0x3ba   : > { %v1241_v39 = vsub.f32 %v2591_v49, %v1213_v26  ;;  %v1244_v43 = vsub.f32 %v1134_v45, %v1225_v32  ;;  %v1229_v46 = vrot.slane %v1196_v18, %v1228_v37  ;;  %v1243_v47 = vsub.f32 %v1131_v55, %v1221_v38 }
 0x3bb   : > { %v1246_v34 = vmul.f32 1.442695, %v1238_v28  ;;  %v1248_v35 = vmul.f32 1.442695, %v1239_v29  ;;  %v1250_v41 = vmul.f32 1.442695, %v1240_v30 }
 0x3bc   : > { %v1254_v44 = vmul.f32 1.442695, %v1242_v33  ;;  %v1252_v48 = vmul.f32 1.442695, %v1241_v39  ;;  %v1258_v51 = vmul.f32 1.442695, %v1244_v43  ;;  %v1245_v53 = vsub.f32 %v1137_v0, %v1229_v46 }
 0x3bd   : > { %2177 = vpow2.f32 %v1246_v34  ;;  %v1256_v54 = vmul.f32 1.442695, %v1243_v47 }
 0x3be   : > { %2179 = vpow2.f32 %v1248_v35  ;;  %v1260_v49 = vmul.f32 1.442695, %v1245_v53 }
 0x3bf   : > { %2181 = vpow2.f32 %v1250_v41 }
 0x3c0   : > { %2183 = vpow2.f32 %v1254_v44 }
 0x3c1   : > { %2185 = vpow2.f32 %v1252_v48 }
 0x3c2   : > { %2187 = vpow2.f32 %v1258_v51 }
 0x3c3   : > { %2189 = vpow2.f32 %v1256_v54 }
 0x3c4   : > { %2191 = vpow2.f32 %v1260_v49 }
 0x3c7   : > { %v2178_v56 = vpop.eup %2177 }
 0x3c8   : > { %v2180_v57 = vpop.eup %2179  ;;  %1271 = vperm.xlu1 %2166, %v2178_v56  }
 0x3c9   : > { %1274 = vperm.xlu0 %2165, %v2180_v57   ;;  %v2182_v58 = vpop.eup %2181 }
 0x3ca   : > { %v2639_v59 = vpop.eup %2183 }
 0x3cb   : > { %v2186_v55 = vpop.eup %2185 }
 0x3cc   : > { %1277 = vperm.xlu1 %2166, %v2182_v58   ;;  %v2642_v45 = vpop.eup %2187 }
 0x3cd   : > { %1283 = vperm.xlu0 %2165, %v2639_v59   ;;  %v2190_v60 = vpop.eup %2189 }
 0x3ce   : > { %v2645_v42 = vpop.eup %2191 }
 0x3d0   : > { %1280 = vperm.xlu1 %2166, %v2186_v55  }
 0x3d1   : > { %1289 = vperm.xlu0 %2165, %v2642_v45  }
 0x3d4   : > { %1286 = vperm.xlu1 %2166, %v2190_v60  }
 0x3d8   : > { %1292 = vperm.xlu1 %2166, %v2645_v42  }
 0x447   : > { %v1272_v62 = vpop.permute.xlu1 %1271 }
 0x448   : > { %v1275_v63 = vpop.permute.xlu0 %1274  ;;  %v1297_v2 = vrot.slane %v1272_v62, %v2595_v50 }
 0x449   : > { %v1301_v27 = vrot.slane %v1275_v63, %v2595_v50 }
 0x44b   : > { %v1278_v0 = vpop.permute.xlu1 %1277  ;;  %v1326_v8 = vsel %vm1178_vm4, %v1301_v27, %v1297_v2 }
 0x44c   : > { %v1305_v3 = vrot.slane %v1278_v0, %v2595_v50  ;;  %v1284_v4 = vpop.permute.xlu0 %1283 }
 0x44d   : > { %v1313_v21 = vrot.slane %v1284_v4, %v2595_v50 }
 0x44e   : > { %v1327_v18 = vsel %vm1180_vm5, %v1305_v3, %v1326_v8 }
 0x44f   : > { %v1281_v7 = vpop.permute.xlu1 %1280 }
 0x450   : > { %v1309_v11 = vrot.slane %v1281_v7, %v2595_v50  ;;  %v1290_v24 = vpop.permute.xlu0 %1289 }
 0x451   : > { %v1321_v30 = vrot.slane %v1290_v24, %v2595_v50 }
 0x452   : > { %v1328_v19 = vsel %vm1182_vm6, %v1309_v11, %v1327_v18 }
 0x453   : > { %v1287_v22 = vpop.permute.xlu1 %1286  ;;  %v1329_v28 = vsel %vm1184_vm7, %v1313_v21, %v1328_v19 }
 0x454   : > { %v1317_v26 = vrot.slane %v1287_v22, %v2595_v50 }
 0x456   : > { %v1330_v29 = vsel %vm1186_vm8, %v1317_v26, %v1329_v28 }
 0x457   : > { %v1293_v32 = vpop.permute.xlu1 %1292  ;;  %v1331_v34 = vsel %vm1188_vm9, %v1321_v30, %v1330_v29 }
 0x458   : > { %v1325_v33 = vrot.slane %v1293_v32, %v2595_v50 }
 0x45a   : > { %v1332_v35 = vsel %vm1190_vm10, %v1325_v33, %v1331_v34 }
 0x45b   : > { %v1334_v38 = vsel %vm1193_vm11, %v1332_v35, 0.0 }
 0x45c   : > { %1335 = vadd.xlane.f32.xlu0 %v1334_v38 }
 0x4e9   : > { %v1336_v39 = vpop.xlane.xlu0 %1335 }
 0x4ea   : > { %v1341_v41 = vrot.slane %v1336_v39, %v2525_v61  ;;  %v1345_v43 = vrot.slane %v1336_v39, %v1204_v13  ;;  %v1349_v44 = vrot.slane %v1336_v39, %v1208_v14  ;;  %v1353_v50 = vrot.slane %v1336_v39, %v1212_v16 }
 0x4eb   : > { %v1357_v47 = vrot.slane %v1336_v39, %v1216_v15  ;;  %v1361_v61 = vrot.slane %v1336_v39, %v1220_v23  ;;  %v1365_v14 = vrot.slane %v1336_v39, %v1224_v17  ;;  %v1369_v15 = vrot.slane %v1336_v39, %v1228_v37  ;;  %v1867_v37 = vld [vmem:[%s2754_s7 + $0x28] sm:$0xff] }
 0x4ec   : > { %2193 = vrcp.f32 %v1341_v41 }
 0x4ed   : > { %2195 = vrcp.f32 %v1345_v43 }
 0x4ee   : > { %2197 = vrcp.f32 %v1349_v44 }
 0x4ef   : > { %2199 = vrcp.f32 %v1353_v50 }
 0x4f0   : > { %2201 = vrcp.f32 %v1357_v47 }
 0x4f1   : > { %2203 = vrcp.f32 %v1361_v61 }
 0x4f2   : > { %2205 = vrcp.f32 %v1365_v14 }
 0x4f3   : > { %2207 = vrcp.f32 %v1369_v15 }
 0x4f6   : > { %v2194_v46 = vpop.eup %2193 }
 0x4f7   : > { %v1379_v48 = vmul.f32 %v2194_v46, %v2178_v56  ;;  %v2196_v51 = vpop.eup %2195 }
 0x4f8   : > { %v1381_v13 = vmul.f32 %v2196_v51, %v2180_v57  ;;  %v2198_v53 = vpop.eup %2197 }
 0x4f9   : > { %1396 = vperm.xlu1 %2166, %v1379_v48   ;;  %v1383_v16 = vmul.f32 %v2198_v53, %v2182_v58  ;;  %v2200_v54 = vpop.eup %2199 }
 0x4fa   : > { %v1385_v56 = vmul.f32 %v2200_v54, %v2186_v55  ;;  %v2202_v49 = vpop.eup %2201  ;;  %v2134_v55 = vpack.c.bf16 %v1867_v37, %v1866_v52 }
 0x4fb   : > { %v1387_v23 = vmul.f32 %v2202_v49, %v2639_v59  ;;  %v2204_v57 = vpop.eup %2203  ;;  %v1868_v59 = vld [vmem:[%s2754_s7 + $0x30] sm:$0xff] }
 0x4fc   : > { %v1389_v62 = vmul.f32 %v2204_v57, %v2190_v60  ;;  %v2206_v63 = vpop.eup %2205  ;;  %2135 = vmatpush3.bf16.msra.mxu0 %v2134_v55 }
 0x4fd   : > { %1401 = vperm.xlu1 %2166, %v1381_v13   ;;  %v1391_v17 = vmul.f32 %v2206_v63, %v2642_v45  ;;  %v2208_v58 = vpop.eup %2207  ;;  %v1869_v45 = vld [vmem:[%s2754_s7 + $0x38] sm:$0xff]  ;;  %2136 = vmatprep.subr.bf16.mxu0 %v2224_v5 }
 0x4fe   : > { %v1393_v0 = vmul.f32 %v2208_v58, %v2645_v42  ;;  %v2137_v60 = vpack.c.bf16 %v1869_v45, %v1868_v59 }
 0x500   : > { %2138 = vmatpush3.bf16.msra.mxu0 %v2137_v60 }
 0x501   : > { %1406 = vperm.xlu1 %2166, %v1383_v16   ;;  %2145 = vmatprep.subr.bf16.mxu0 %v2224_v5 }
 0x505   : > { %1411 = vperm.xlu1 %2166, %v1385_v56  }
 0x509   : > { %1416 = vperm.xlu1 %2166, %v1387_v23  }
 0x50d   : > { %1421 = vperm.xlu1 %2166, %v1389_v62  }
 0x511   : > { %1426 = vperm.xlu1 %2166, %v1391_v17  }
 0x515   : > { %1431 = vperm.xlu1 %2166, %v1393_v0  }
 0x578   : > { %v1397_v42 = vpop.permute.xlu1 %1396 }
 0x579   : > { %v1434_v4 = vmul.f32 %v1397_v42, %v2530_v1 }
 0x57b   : > { %v1442_v19 = vsel %vm522_vm2, %v1434_v4, 0.0 }
 0x57c   : > { %v1402_v27 = vpop.permute.xlu1 %1401  ;;  %v1443_v28 = vrot.slane %v1442_v19, 4 }
 0x57d   : > { %v1435_v2 = vmul.f32 %v1402_v27, %v2536_v6 }
 0x57e   : > { %v1444_v33 = vadd.f32 %v1443_v28, %v1442_v19 }
 0x57f   : > { %v1449_v8 = vsel %vm522_vm2, %v1435_v2, 0.0 }
 0x580   : > { %v1407_v3 = vpop.permute.xlu1 %1406  ;;  %v1450_v22 = vrot.slane %v1449_v8, 4  ;;  %v1445_v50 = vrot.slane %v1444_v33, 2 }
 0x581   : > { %v1436_v7 = vmul.f32 %v1407_v3, %v2544_v12 }
 0x582   : > { %v1451_v30 = vadd.f32 %v1450_v22, %v1449_v8  ;;  %v1446_v16 = vadd.f32 %v1445_v50, %v1444_v33 }
 0x583   : > { %v1456_v11 = vsel %vm522_vm2, %v1436_v7, 0.0 }
 0x584   : > { %v1412_v18 = vpop.permute.xlu1 %1411  ;;  %v1457_v24 = vrot.slane %v1456_v11, 4 }
 0x585   : > { %v1437_v21 = vmul.f32 %v1412_v18, %v2562_v25  ;;  %v1452_v25 = vrot.slane %v1451_v30, 2 }
 0x586   : > { %v1458_v12 = vadd.f32 %v1457_v24, %v1456_v11 }
 0x587   : > { %v1463_v26 = vsel %vm522_vm2, %v1437_v21, 0.0  ;;  %v1453_v61 = vadd.f32 %v1452_v25, %v1451_v30  ;;  %v1675_v30 = vld [vmem:[%s2756_s9] sm:$0xff] }
 0x588   : > { %v1464_v6 = vrot.slane %v1463_v26, 4  ;;  %v1417_v29 = vpop.permute.xlu1 %1416  ;;  %v1459_v43 = vrot.slane %v1458_v12, 2 }
 0x589   : > { %v1438_v1 = vmul.f32 %v1417_v29, %v2554_v20  ;;  %v1454_v57 = vrot.slane %v1453_v61, 1 }
 0x58a   : > { %v1465_v34 = vadd.f32 %v1464_v6, %v1463_v26  ;;  %v1460_v53 = vadd.f32 %v1459_v43, %v1458_v12  ;;  %v1676_v12 = vld [vmem:[%s2756_s9 + $0x8] sm:$0xff] }
 0x58b   : > { %v1470_v32 = vsel %vm522_vm2, %v1438_v1, 0.0  ;;  %v1455_v55 = vadd.f32 %v1454_v57, %v1453_v61  ;;  %v2146_v33 = vpack.c.bf16 %v1676_v12, %v1675_v30 }
 0x58c   : > { %v1471_v35 = vrot.slane %v1470_v32, 4  ;;  %v1422_v38 = vpop.permute.xlu1 %1421  ;;  %v1466_v46 = vrot.slane %v1465_v34, 2  ;;  %v1461_v17 = vrot.slane %v1460_v53, 1 }
 0x58d   : > { %v1439_v39 = vmul.f32 %v1422_v38, %v2570_v31  ;;  %v1872_v38 = vld [vmem:[%s2755_s8] ss:$0 sm:$0xff] }
 0x58e   : > { %v1472_v41 = vadd.f32 %v1471_v35, %v1470_v32  ;;  %v1467_v54 = vadd.f32 %v1466_v46, %v1465_v34  ;;  %v1462_v27 = vadd.f32 %v1461_v17, %v1460_v53  ;;  %v1677_v32 = vld [vmem:[%s2756_s9 + $0x10] sm:$0xff]  ;;  %v1678_v34 = vld [vmem:[%s2756_s9 + $0x18] sm:$0xff] }
 0x58f   : > { %v1477_v44 = vsel %vm522_vm2, %v1439_v39, 0.0  ;;  %v2149_v35 = vpack.c.bf16 %v1678_v34, %v1677_v32 }
 0x590   : > { %v1478_v47 = vrot.slane %v1477_v44, 4  ;;  %v1427_v48 = vpop.permute.xlu1 %1426  ;;  %v1473_v20 = vrot.slane %v1472_v41, 2  ;;  %v1468_v0 = vrot.slane %v1467_v54, 1 }
 0x591   : > { %v1440_v51 = vmul.f32 %v1427_v48, %v2578_v36  ;;  %v1447_v36 = vrot.slane %v1446_v16, 1 }
 0x592   : > { %v1479_v13 = vadd.f32 %v1478_v47, %v1477_v44  ;;  %v1474_v49 = vadd.f32 %v1473_v20, %v1472_v41  ;;  %v1469_v3 = vadd.f32 %v1468_v0, %v1467_v54  ;;  %v1873_v44 = vld [vmem:[%s2757_s10] ss:$0 sm:$0xff] }
 0x593   : > { %v1484_v14 = vsel %vm522_vm2, %v1440_v51, 0.0  ;;  %v1448_v2 = vadd.f32 %v1447_v36, %v1446_v16 }
 0x594   : > { %v1480_v31 = vrot.slane %v1479_v13, 2  ;;  %v1485_v15 = vrot.slane %v1484_v14, 4  ;;  %v1432_v56 = vpop.permute.xlu1 %1431  ;;  %v1475_v59 = vrot.slane %v1474_v49, 1 }
 0x595   : > { %v1441_v23 = vmul.f32 %v1432_v56, %v2586_v40  ;;  %v1515_v8 = vsel %vm1178_vm4, %v1455_v55, %v1448_v2 }
 0x596   : > { %v1481_v62 = vadd.f32 %v1480_v31, %v1479_v13  ;;  %v1486_v63 = vadd.f32 %v1485_v15, %v1484_v14  ;;  %v1476_v7 = vadd.f32 %v1475_v59, %v1474_v49  ;;  %v1516_v19 = vsel %vm1180_vm5, %v1462_v27, %v1515_v8 }
 0x597   : > { %v1491_v58 = vsel %vm522_vm2, %v1441_v23, 0.0  ;;  %v1517_v22 = vsel %vm1182_vm6, %v1469_v3, %v1516_v19 }
 0x598   : > { %v1487_v52 = vrot.slane %v1486_v63, 2  ;;  %v1492_v37 = vrot.slane %v1491_v58, 4  ;;  %v1482_v45 = vrot.slane %v1481_v62, 1  ;;  %v1518_v26 = vsel %vm1184_vm7, %v1476_v7, %v1517_v22 }
 0x59a   : > { %v1488_v60 = vadd.f32 %v1487_v52, %v1486_v63  ;;  %v1493_v42 = vadd.f32 %v1492_v37, %v1491_v58  ;;  %v1483_v11 = vadd.f32 %v1482_v45, %v1481_v62 }
 0x59c   : > { %v1489_v4 = vrot.slane %v1488_v60, 1  ;;  %v1494_v40 = vrot.slane %v1493_v42, 2  ;;  %v1519_v6 = vsel %vm1186_vm8, %v1483_v11, %v1518_v26 }
 0x59e   : > { %v1495_v18 = vadd.f32 %v1494_v40, %v1493_v42  ;;  %v1490_v21 = vadd.f32 %v1489_v4, %v1488_v60 }
 0x5a0   : > { %v1496_v24 = vrot.slane %v1495_v18, 1  ;;  %v1520_v29 = vsel %vm1188_vm9, %v1490_v21, %v1519_v6 }
 0x5a2   : > { %v1497_v28 = vadd.f32 %v1496_v24, %v1495_v18 }
 0x5a4   : > { %v1521_v1 = vsel %vm1190_vm10, %v1497_v28, %v1520_v29 }
 0x5a5   : > { %2049 = vmatmul.mubr.msk.f32.vlgmr.msra.gmra.mrb[4].mxu0 %vm522_vm2, %v1521_v1 }
 0x5a6   : > { %2070 = vmatprep.mubr.msk.f32.mxu0 %vm2225_vm1, %v2226_v9  ;;  %2147 = vmatpush3.bf16.msra.mxu0 %v2146_v33 }
 0x5a7   : > { %2148 = vmatprep.subr.bf16.mxu0 %v2224_v5 }
 0x5aa   : > { %2150 = vmatpush3.bf16.msra.mxu0 %v2149_v35 }
 0x678   : > { %v1590_v9 = vpop.f32.mrb[4].mxu0 }
 0x679   : > { %v1663_v39 = vadd.f32 %v2614_v10, %v1590_v9  ;;  %v2050_v25 = vpop.f32.mrb[5].mxu0 }
 0x67b   : > { %v1673_v41 = vadd.f32 %v1872_v38, %v1663_v39 }
 0x67d   : > { %2209 = vtanh.f32 %v1673_v41 }
 0x687   : > { %v2210_v43 = vpop.eup %2209 }
 0x688   : > { %2071 = vmatmul.mubr.msk.f32.vlgmr.msra.gmra.mrb[6].mxu0 %vm522_vm2, %v2210_v43 }
 0x75b   : > { %v1755_v5 = vpop.f32.mrb[6].mxu0 }
 0x75c   : > { %v1756_v50 = vadd.f32 %v1873_v44, %v1755_v5  ;;  %v2072_v46 = vpop.f32.mrb[7].mxu0 }
 0x75e   : > { %1759 = vmax.xlane.f32.xlu0 %v1756_v50 }
 0x7eb   : > { %v1760_v47 = vpop.xlane.xlu0 %1759 }
 0x7ec   : > { %v1761_v48 = vsub.f32 %v1756_v50, %v1760_v47 }
 0x7ee   : > { %v1762_v20 = vmul.f32 1.442695, %v1761_v48 }
 0x7f0   : > { %2211 = vpow2.f32 %v1762_v20 }
 0x7fa   : > { %v2212_v10 = vpop.eup %2211 }
 0x7fb   : > { %1764 = vadd.xlane.f32.xlu1 %v2212_v10 }
 0x888   : > { %v1765_v51 = vpop.xlane.xlu1 %1764 }
 0x889   : > { %2213 = vrcp.f32 %v1765_v51 }
 0x893   : > { %v2214_v61 = vpop.eup %2213 }
 0x894   : > { %v1767_v13 = vmul.f32 %v2214_v61, %v2212_v10 }
 0x896   : > { %1768 = vst [vmem:[%s2308_s30] sm:$0xff] %v1767_v13 }
 0x897 PF: > { %s23_s21 = sadd.s32 1, %s2221_s21  }
 0x898   : > { %p20_p5 = scmp.ge.s32.totalorder %s23_s21, 8  }
 0x89a   :  { %22 = sbr.rel (!%p20_p5) target bundleno = 1 (0x1), region = 111 }

</bundles_post_ra>
